<compile_context>
chip_gen: v7x
topology: tpu7x:2x2x1
jax: 0.10.0
libtpu: 0.0.40
codegen_flags: <defaults>
</compile_context>

<pallas_src>
import math

import jax
import jax.numpy as jnp
from jax.experimental import pallas as pl
from jax.experimental.pallas import tpu as pltpu


def _mha_kernel(batch, seq_len, input_dim, num_heads):
    B, S, D, H = batch, seq_len, input_dim, num_heads
    hd = D // H

    def kernel(x_ref, wqkv_ref, bqkv_ref, wo_ref, bo_ref, o_ref):
        x = x_ref[...]                                                   # (B*S, D)

        # Fused Q|K|V projection; the 1/sqrt(head_dim) scale is pre-folded into
        # the Q columns of w_qkv/b_qkv at parameter-packing time.
        qkv = jnp.dot(x, wqkv_ref[...],
                      preferred_element_type=jnp.float32) + bqkv_ref[...]  # (B*S, 3D)

        head_ctx = []
        for h in range(H):
            c = h * hd
            qh = qkv[:, 0 * D + c:0 * D + c + hd].reshape(B, S, hd)
            kh = qkv[:, 1 * D + c:1 * D + c + hd].reshape(B, S, hd)
            vh = qkv[:, 2 * D + c:2 * D + c + hd].reshape(B, S, hd)

            # Batched over B; contraction over the last dims — no explicit transpose.
            s = jnp.einsum('bqd,bkd->bqk', qh, kh,
                           preferred_element_type=jnp.float32)           # (B, S, S)
            m = jnp.max(s, axis=-1, keepdims=True)
            e = jnp.exp(s - m)
            p = e / jnp.sum(e, axis=-1, keepdims=True)                   # exact softmax
            ctx = jnp.einsum('bqk,bkd->bqd', p, vh,
                             preferred_element_type=jnp.float32)         # (B, S, hd)
            head_ctx.append(ctx.reshape(B * S, hd))

        ctx = jnp.concatenate(head_ctx, axis=-1)                         # (B*S, D)

        out = jnp.dot(ctx, wo_ref[...],
                      preferred_element_type=jnp.float32) + bo_ref[...]
        o_ref[...] = out.astype(o_ref.dtype)                             # straight store

    return kernel


def pack_mha_params(params, num_heads):
    """One-time parameter transform: pack Q|K|V and fold 1/sqrt(head_dim) into Q."""
    D = params["wq"].shape[0]
    assert D % num_heads == 0, "input_dim must be divisible by num_heads"
    inv_scale = 1.0 / math.sqrt(float(D // num_heads))
    w_qkv = jnp.concatenate(
        [params["wq"] * inv_scale, params["wk"], params["wv"]], axis=1)   # (D, 3D)
    b_qkv = jnp.concatenate(
        [params["bq"] * inv_scale, params["bk"], params["bv"]], axis=1)   # (1, 3D)
    return dict(w_qkv=w_qkv, b_qkv=b_qkv, wo=params["wo"], bo=params["bo"])


def multi_head_attention(x, packed, num_heads):
    """x: [B, S, D] float32; packed: output of pack_mha_params()."""
    B, S, D = x.shape
    assert D % num_heads == 0, "input_dim must be divisible by num_heads"

    vmem = lambda: pl.BlockSpec(memory_space=pltpu.MemorySpace.VMEM)

    # grid=(): whole problem fits trivially in VMEM -> single invocation, zero
    # per-step pipeline overhead. See scaling notes at top for large B*S.
    out2 = pl.pallas_call(
        _mha_kernel(B, S, D, num_heads),
        out_shape=jax.ShapeDtypeStruct((B * S, D), x.dtype),
        in_specs=[vmem()] * 5,
        out_specs=vmem(),
    )(x.reshape(B * S, D),               # free view; no in-kernel relayout
      packed["w_qkv"], packed["b_qkv"], packed["wo"], packed["bo"])
    return out2.reshape(B, S, D)


def _reference(x, params, num_heads):
    """Pure-JAX reference mirroring the PyTorch forward (eval mode)."""
    B, S, D = x.shape
    hd = D // num_heads
    scale = jnp.sqrt(jnp.float32(hd))
    hp = jax.lax.Precision.HIGHEST

    def proj(w, b):
        return jnp.dot(x, w, precision=hp) + b[0]

    def split(t):
        return t.reshape(B, S, num_heads, hd).transpose(0, 2, 1, 3)

    Q = split(proj(params["wq"], params["bq"]))
    K = split(proj(params["wk"], params["bk"]))
    V = split(proj(params["wv"], params["bv"]))
    energy = jnp.einsum('bhqd,bhkd->bhqk', Q, K, precision=hp) / scale
    attn = jax.nn.softmax(energy, axis=-1)
    ctx = jnp.einsum('bhqk,bhkd->bhqd', attn, V, precision=hp)
    ctx = ctx.transpose(0, 2, 1, 3).reshape(B, S, D)
    return jnp.dot(ctx, params["wo"], precision=hp) + params["bo"][0]


if __name__ == "__main__":
    B, S, D = 2, 8, 32
    num_heads = 4

    key = jax.random.PRNGKey(0)
    keys = jax.random.split(key, 9)

    x = jax.random.normal(keys[0], (B, S, D), dtype=jnp.float32)

    def init_linear(kw, kb):
        # deterministic init; stored as [in, out] (i.e. PyTorch W^T), bias [1, D]
        w = jax.random.normal(kw, (D, D), dtype=jnp.float32) * 0.05
        b = jax.random.normal(kb, (1, D), dtype=jnp.float32) * 0.05
        return w, b

    wq, bq = init_linear(keys[1], keys[2])
    wk, bk = init_linear(keys[3], keys[4])
    wv, bv = init_linear(keys[5], keys[6])
    wo, bo = init_linear(keys[7], keys[8])

    params = dict(wq=wq, bq=bq, wk=wk, bk=bk, wv=wv, bv=bv, wo=wo, bo=bo)

    # One-time weight transform (would live at module-init time in a real model).
    packed = pack_mha_params(params, num_heads)

    out = jax.block_until_ready(multi_head_attention(x, packed, num_heads))
    ref = jax.block_until_ready(_reference(x, params, num_heads))

    assert out.shape == (B, S, D)
    # Exact softmax division -> tolerance only covers f32 accumulation-order diffs.
    assert jnp.allclose(out, ref, atol=1e-4, rtol=1e-4), "mismatch vs JAX reference"

    print("KERNEL_OK")
</pallas_src>

<mosaic_0001>
module attributes {stable_mosaic.version = 11 : i64} {
  func.func @kernel(%arg0: memref<16x32xf32, #tpu.memory_space<vmem>>, %arg1: memref<32x96xf32, #tpu.memory_space<vmem>>, %arg2: memref<1x96xf32, #tpu.memory_space<vmem>>, %arg3: memref<32x32xf32, #tpu.memory_space<vmem>>, %arg4: memref<1x32xf32, #tpu.memory_space<vmem>>, %arg5: memref<16x32xf32, #tpu.memory_space<vmem>>) attributes {dimension_semantics = [], scalar_prefetch = 0 : i64, scratch_operands = 0 : i64, tpu.core_type = #tpu.core_type<tc>} {
    %c0 = arith.constant 0 : index
    %c0_0 = arith.constant 0 : index
    %0 = vector.load %arg0[%c0, %c0_0] : memref<16x32xf32, #tpu.memory_space<vmem>>, vector<16x32xf32>
    %c0_1 = arith.constant 0 : index
    %c0_2 = arith.constant 0 : index
    %1 = vector.load %arg1[%c0_1, %c0_2] : memref<32x96xf32, #tpu.memory_space<vmem>>, vector<32x96xf32>
    %cst = arith.constant dense<0.000000e+00> : vector<16x96xf32>
    %2 = tpu.matmul %0, %1, %cst {dimension_numbers = #tpu.dot_dimension_numbers<[1], [0], [0], [1], [0, 0, 1, 1], [], []>} : vector<16x32xf32>, vector<32x96xf32>, vector<16x96xf32> -> vector<16x96xf32>
    %c0_3 = arith.constant 0 : index
    %c0_4 = arith.constant 0 : index
    %3 = vector.load %arg2[%c0_3, %c0_4] : memref<1x96xf32, #tpu.memory_space<vmem>>, vector<1x96xf32>
    %4 = vector.broadcast %3 : vector<1x96xf32> to vector<16x96xf32>
    %5 = arith.addf %2, %4 : vector<16x96xf32>
    %6 = vector.extract_strided_slice %5 {offsets = [0, 0], sizes = [16, 8], strides = [1, 1]} : vector<16x96xf32> to vector<16x8xf32>
    %7 = vector.shape_cast %6 : vector<16x8xf32> to vector<2x8x8xf32>
    %8 = vector.extract_strided_slice %5 {offsets = [0, 32], sizes = [16, 8], strides = [1, 1]} : vector<16x96xf32> to vector<16x8xf32>
    %9 = vector.shape_cast %8 : vector<16x8xf32> to vector<2x8x8xf32>
    %10 = vector.extract_strided_slice %5 {offsets = [0, 64], sizes = [16, 8], strides = [1, 1]} : vector<16x96xf32> to vector<16x8xf32>
    %11 = vector.shape_cast %10 : vector<16x8xf32> to vector<2x8x8xf32>
    "tpu.trace_start"() <{level = 10 : i32, message = "bqd,bkd->bqk"}> : () -> ()
    %cst_5 = arith.constant dense<0.000000e+00> : vector<2x8x8xf32>
    %12 = tpu.matmul %7, %9, %cst_5 {dimension_numbers = #tpu.dot_dimension_numbers<[2], [2], [1], [1], [0, 0, 0, 1, 1, 1], [0], [0]>} : vector<2x8x8xf32>, vector<2x8x8xf32>, vector<2x8x8xf32> -> vector<2x8x8xf32>
    "tpu.trace_stop"() : () -> ()
    %cst_6 = arith.constant dense<0xFF800000> : vector<2x8xf32>
    %13 = vector.multi_reduction <maximumf>, %12, %cst_6 [2] : vector<2x8x8xf32> to vector<2x8xf32>
    %14 = vector.shape_cast %13 : vector<2x8xf32> to vector<2x8x1xf32>
    %15 = vector.broadcast %14 : vector<2x8x1xf32> to vector<2x8x8xf32>
    %16 = arith.subf %12, %15 : vector<2x8x8xf32>
    %17 = math.exp %16 : vector<2x8x8xf32>
    %cst_7 = arith.constant dense<0.000000e+00> : vector<2x8xf32>
    %18 = vector.multi_reduction <add>, %17, %cst_7 [2] : vector<2x8x8xf32> to vector<2x8xf32>
    %19 = vector.shape_cast %18 : vector<2x8xf32> to vector<2x8x1xf32>
    %20 = vector.broadcast %19 : vector<2x8x1xf32> to vector<2x8x8xf32>
    %21 = arith.divf %17, %20 : vector<2x8x8xf32>
    "tpu.trace_start"() <{level = 10 : i32, message = "bqk,bkd->bqd"}> : () -> ()
    %cst_8 = arith.constant dense<0.000000e+00> : vector<2x8x8xf32>
    %22 = tpu.matmul %21, %11, %cst_8 {dimension_numbers = #tpu.dot_dimension_numbers<[2], [1], [1], [2], [0, 0, 0, 1, 1, 2], [0], [0]>} : vector<2x8x8xf32>, vector<2x8x8xf32>, vector<2x8x8xf32> -> vector<2x8x8xf32>
    "tpu.trace_stop"() : () -> ()
    %23 = vector.shape_cast %22 : vector<2x8x8xf32> to vector<16x8xf32>
    %24 = vector.extract_strided_slice %5 {offsets = [0, 8], sizes = [16, 8], strides = [1, 1]} : vector<16x96xf32> to vector<16x8xf32>
    %25 = vector.shape_cast %24 : vector<16x8xf32> to vector<2x8x8xf32>
    %26 = vector.extract_strided_slice %5 {offsets = [0, 40], sizes = [16, 8], strides = [1, 1]} : vector<16x96xf32> to vector<16x8xf32>
    %27 = vector.shape_cast %26 : vector<16x8xf32> to vector<2x8x8xf32>
    %28 = vector.extract_strided_slice %5 {offsets = [0, 72], sizes = [16, 8], strides = [1, 1]} : vector<16x96xf32> to vector<16x8xf32>
    %29 = vector.shape_cast %28 : vector<16x8xf32> to vector<2x8x8xf32>
    "tpu.trace_start"() <{level = 10 : i32, message = "bqd,bkd->bqk"}> : () -> ()
    %cst_9 = arith.constant dense<0.000000e+00> : vector<2x8x8xf32>
    %30 = tpu.matmul %25, %27, %cst_9 {dimension_numbers = #tpu.dot_dimension_numbers<[2], [2], [1], [1], [0, 0, 0, 1, 1, 1], [0], [0]>} : vector<2x8x8xf32>, vector<2x8x8xf32>, vector<2x8x8xf32> -> vector<2x8x8xf32>
    "tpu.trace_stop"() : () -> ()
    %cst_10 = arith.constant dense<0xFF800000> : vector<2x8xf32>
    %31 = vector.multi_reduction <maximumf>, %30, %cst_10 [2] : vector<2x8x8xf32> to vector<2x8xf32>
    %32 = vector.shape_cast %31 : vector<2x8xf32> to vector<2x8x1xf32>
    %33 = vector.broadcast %32 : vector<2x8x1xf32> to vector<2x8x8xf32>
    %34 = arith.subf %30, %33 : vector<2x8x8xf32>
    %35 = math.exp %34 : vector<2x8x8xf32>
    %cst_11 = arith.constant dense<0.000000e+00> : vector<2x8xf32>
    %36 = vector.multi_reduction <add>, %35, %cst_11 [2] : vector<2x8x8xf32> to vector<2x8xf32>
    %37 = vector.shape_cast %36 : vector<2x8xf32> to vector<2x8x1xf32>
    %38 = vector.broadcast %37 : vector<2x8x1xf32> to vector<2x8x8xf32>
    %39 = arith.divf %35, %38 : vector<2x8x8xf32>
    "tpu.trace_start"() <{level = 10 : i32, message = "bqk,bkd->bqd"}> : () -> ()
    %cst_12 = arith.constant dense<0.000000e+00> : vector<2x8x8xf32>
    %40 = tpu.matmul %39, %29, %cst_12 {dimension_numbers = #tpu.dot_dimension_numbers<[2], [1], [1], [2], [0, 0, 0, 1, 1, 2], [0], [0]>} : vector<2x8x8xf32>, vector<2x8x8xf32>, vector<2x8x8xf32> -> vector<2x8x8xf32>
    "tpu.trace_stop"() : () -> ()
    %41 = vector.shape_cast %40 : vector<2x8x8xf32> to vector<16x8xf32>
    %42 = vector.extract_strided_slice %5 {offsets = [0, 16], sizes = [16, 8], strides = [1, 1]} : vector<16x96xf32> to vector<16x8xf32>
    %43 = vector.shape_cast %42 : vector<16x8xf32> to vector<2x8x8xf32>
    %44 = vector.extract_strided_slice %5 {offsets = [0, 48], sizes = [16, 8], strides = [1, 1]} : vector<16x96xf32> to vector<16x8xf32>
    %45 = vector.shape_cast %44 : vector<16x8xf32> to vector<2x8x8xf32>
    %46 = vector.extract_strided_slice %5 {offsets = [0, 80], sizes = [16, 8], strides = [1, 1]} : vector<16x96xf32> to vector<16x8xf32>
    %47 = vector.shape_cast %46 : vector<16x8xf32> to vector<2x8x8xf32>
    "tpu.trace_start"() <{level = 10 : i32, message = "bqd,bkd->bqk"}> : () -> ()
    %cst_13 = arith.constant dense<0.000000e+00> : vector<2x8x8xf32>
    %48 = tpu.matmul %43, %45, %cst_13 {dimension_numbers = #tpu.dot_dimension_numbers<[2], [2], [1], [1], [0, 0, 0, 1, 1, 1], [0], [0]>} : vector<2x8x8xf32>, vector<2x8x8xf32>, vector<2x8x8xf32> -> vector<2x8x8xf32>
    "tpu.trace_stop"() : () -> ()
    %cst_14 = arith.constant dense<0xFF800000> : vector<2x8xf32>
    %49 = vector.multi_reduction <maximumf>, %48, %cst_14 [2] : vector<2x8x8xf32> to vector<2x8xf32>
    %50 = vector.shape_cast %49 : vector<2x8xf32> to vector<2x8x1xf32>
    %51 = vector.broadcast %50 : vector<2x8x1xf32> to vector<2x8x8xf32>
    %52 = arith.subf %48, %51 : vector<2x8x8xf32>
    %53 = math.exp %52 : vector<2x8x8xf32>
    %cst_15 = arith.constant dense<0.000000e+00> : vector<2x8xf32>
    %54 = vector.multi_reduction <add>, %53, %cst_15 [2] : vector<2x8x8xf32> to vector<2x8xf32>
    %55 = vector.shape_cast %54 : vector<2x8xf32> to vector<2x8x1xf32>
    %56 = vector.broadcast %55 : vector<2x8x1xf32> to vector<2x8x8xf32>
    %57 = arith.divf %53, %56 : vector<2x8x8xf32>
    "tpu.trace_start"() <{level = 10 : i32, message = "bqk,bkd->bqd"}> : () -> ()
    %cst_16 = arith.constant dense<0.000000e+00> : vector<2x8x8xf32>
    %58 = tpu.matmul %57, %47, %cst_16 {dimension_numbers = #tpu.dot_dimension_numbers<[2], [1], [1], [2], [0, 0, 0, 1, 1, 2], [0], [0]>} : vector<2x8x8xf32>, vector<2x8x8xf32>, vector<2x8x8xf32> -> vector<2x8x8xf32>
    "tpu.trace_stop"() : () -> ()
    %59 = vector.shape_cast %58 : vector<2x8x8xf32> to vector<16x8xf32>
    %60 = vector.extract_strided_slice %5 {offsets = [0, 24], sizes = [16, 8], strides = [1, 1]} : vector<16x96xf32> to vector<16x8xf32>
    %61 = vector.shape_cast %60 : vector<16x8xf32> to vector<2x8x8xf32>
    %62 = vector.extract_strided_slice %5 {offsets = [0, 56], sizes = [16, 8], strides = [1, 1]} : vector<16x96xf32> to vector<16x8xf32>
    %63 = vector.shape_cast %62 : vector<16x8xf32> to vector<2x8x8xf32>
    %64 = vector.extract_strided_slice %5 {offsets = [0, 88], sizes = [16, 8], strides = [1, 1]} : vector<16x96xf32> to vector<16x8xf32>
    %65 = vector.shape_cast %64 : vector<16x8xf32> to vector<2x8x8xf32>
    "tpu.trace_start"() <{level = 10 : i32, message = "bqd,bkd->bqk"}> : () -> ()
    %cst_17 = arith.constant dense<0.000000e+00> : vector<2x8x8xf32>
    %66 = tpu.matmul %61, %63, %cst_17 {dimension_numbers = #tpu.dot_dimension_numbers<[2], [2], [1], [1], [0, 0, 0, 1, 1, 1], [0], [0]>} : vector<2x8x8xf32>, vector<2x8x8xf32>, vector<2x8x8xf32> -> vector<2x8x8xf32>
    "tpu.trace_stop"() : () -> ()
    %cst_18 = arith.constant dense<0xFF800000> : vector<2x8xf32>
    %67 = vector.multi_reduction <maximumf>, %66, %cst_18 [2] : vector<2x8x8xf32> to vector<2x8xf32>
    %68 = vector.shape_cast %67 : vector<2x8xf32> to vector<2x8x1xf32>
    %69 = vector.broadcast %68 : vector<2x8x1xf32> to vector<2x8x8xf32>
    %70 = arith.subf %66, %69 : vector<2x8x8xf32>
    %71 = math.exp %70 : vector<2x8x8xf32>
    %cst_19 = arith.constant dense<0.000000e+00> : vector<2x8xf32>
    %72 = vector.multi_reduction <add>, %71, %cst_19 [2] : vector<2x8x8xf32> to vector<2x8xf32>
    %73 = vector.shape_cast %72 : vector<2x8xf32> to vector<2x8x1xf32>
    %74 = vector.broadcast %73 : vector<2x8x1xf32> to vector<2x8x8xf32>
    %75 = arith.divf %71, %74 : vector<2x8x8xf32>
    "tpu.trace_start"() <{level = 10 : i32, message = "bqk,bkd->bqd"}> : () -> ()
    %cst_20 = arith.constant dense<0.000000e+00> : vector<2x8x8xf32>
    %76 = tpu.matmul %75, %65, %cst_20 {dimension_numbers = #tpu.dot_dimension_numbers<[2], [1], [1], [2], [0, 0, 0, 1, 1, 2], [0], [0]>} : vector<2x8x8xf32>, vector<2x8x8xf32>, vector<2x8x8xf32> -> vector<2x8x8xf32>
    "tpu.trace_stop"() : () -> ()
    %77 = vector.shape_cast %76 : vector<2x8x8xf32> to vector<16x8xf32>
    %78 = tpu.concatenate %23, %41, %59, %77 in 1 : vector<16x8xf32>, vector<16x8xf32>, vector<16x8xf32>, vector<16x8xf32> -> vector<16x32xf32>
    %c0_21 = arith.constant 0 : index
    %c0_22 = arith.constant 0 : index
    %79 = vector.load %arg3[%c0_21, %c0_22] : memref<32x32xf32, #tpu.memory_space<vmem>>, vector<32x32xf32>
    %cst_23 = arith.constant dense<0.000000e+00> : vector<16x32xf32>
    %80 = tpu.matmul %78, %79, %cst_23 {dimension_numbers = #tpu.dot_dimension_numbers<[1], [0], [0], [1], [0, 0, 1, 1], [], []>} : vector<16x32xf32>, vector<32x32xf32>, vector<16x32xf32> -> vector<16x32xf32>
    %c0_24 = arith.constant 0 : index
    %c0_25 = arith.constant 0 : index
    %81 = vector.load %arg4[%c0_24, %c0_25] : memref<1x32xf32, #tpu.memory_space<vmem>>, vector<1x32xf32>
    %82 = vector.broadcast %81 : vector<1x32xf32> to vector<16x32xf32>
    %83 = arith.addf %80, %82 : vector<16x32xf32>
    %c0_26 = arith.constant 0 : index
    %c0_27 = arith.constant 0 : index
    %84 = vector.load %arg5[%c0_26, %c0_27] : memref<16x32xf32, #tpu.memory_space<vmem>>, vector<16x32xf32>
    tpu.vector_store %arg5[%c0_26, %c0_27], %83 {strides = array<i32>} : memref<16x32xf32, #tpu.memory_space<vmem>>, vector<16x32xf32>,
    return
  }
}

</mosaic_0001>

<bundles_post_ra>
// kernel: tpu_custom_call.1
= control target key start
LH: loop header
LB: loop body
LE: loop exit
PB: predicated region body
PF: predicated region fallthrough
CT: control target
= control target key end

     0   :  { %10 = vsyncpa [#allocation3], 0  ;;  %s2221_s0 = inlined_call_operand.hbm [shape: f32[16,32], index: 0, kind: input, shape index: {}]   ;;  %s2222_s1 = inlined_call_operand.hbm [shape: f32[32,96], index: 1, kind: input, shape index: {}]   ;;  %s2223_s2 = inlined_call_operand.vmem [shape: f32[1,96], index: 2, kind: input, shape index: {}]   ;;  %s2224_s3 = inlined_call_operand.hbm [shape: f32[32,32], index: 3, kind: input, shape index: {}]   ;;  %s2225_s4 = inlined_call_operand.vmem [shape: f32[1,32], index: 4, kind: input, shape index: {}]   ;;  %s2226_s5 = inlined_call_operand.hbm [shape: f32[16,32], index: 5, kind: output, shape index: {}]  }
   0x1   :  { %11 = vsyncpa [#allocation6], 0 }
   0x2   :  { %12 = vsyncpa [#allocation4], 0  ;;  %s1959_s18 = smov [#allocation5]   ;;  %s1960_s20 = smov [#allocation2]  }
   0x3   :  { %s30_s19 = sshll.u32 %s1959_s18, 4  ;;  %s18_s21 = sshll.u32 %s1960_s20, 4  ;;  %s31_s19 = int_to_ptr.vmem [resolvable:$true] %s30_s19  ;;  %s2010_s21 = int_to_ptr.vmem [resolvable:$true] %s18_s21 }
   0x4   :  { %s1865_s24 = scalar_lea.hbm %s2222_s1, 512 }
   0x5   :  { %p1866_p0 = scmp.ne.s32.totalorder %s2222_s1, %s1865_s24  ;;  %p1869_p1 = scmp.lt.u32.totalorder %s1865_s24, %s2222_s1 }
   0x7   :  { %p1871_p2 = pnand %p1869_p1, %p1866_p0 }
   0x9   :  { %1874 = shalt.err (!%p1871_p2)
}
   0xa   :  { %s1875_s29 = scalar_lea.vmem %s31_s19, 512  ;;  %p1880_p4 = scmp.lt.s32.totalorder %s31_s19, %s31_s19 }
   0xb   :  { %p1876_p3 = scmp.ne.s32.totalorder %s31_s19, %s1875_s29  ;;  %p1881_p5 = scmp.lt.s32.totalorder %s1875_s29, %s1875_s29 }
   0xd   :  { %p1882_p6 = por %p1881_p5, %p1880_p4 }
   0xf   :  { %p1883_p7 = pnand %p1882_p6, %p1876_p3 }
  0x11   :  { %1886 = shalt.err (!%p1883_p7)
}
  0x12   :  { %s1961_s30 = smov 128   ;;  %s1962_s6 = smov 8  }
  0x13   :  { %36 = dma.hbm_to_vmem [thread:$0]  %s2222_s1, 512, %s31_s19, [#allocation6], %s1961_s30, %s1961_s30, %s1962_s6  }
  0x14   :  { %s1887_s11 = scalar_lea.hbm %s2221_s0, 256 }
  0x15   :  { %p1888_p8 = scmp.ne.s32.totalorder %s2221_s0, %s1887_s11  ;;  %p1891_p9 = scmp.lt.u32.totalorder %s1887_s11, %s2221_s0 }
  0x17   :  { %p1893_p10 = pnand %p1891_p9, %p1888_p8 }
  0x19   :  { %1896 = shalt.err (!%p1893_p10)
}
  0x1a   :  { %s1897_s16 = scalar_lea.vmem %s2010_s21, 256  ;;  %p1902_p12 = scmp.lt.s32.totalorder %s2010_s21, %s2010_s21 }
  0x1b   :  { %p1898_p11 = scmp.ne.s32.totalorder %s2010_s21, %s1897_s16  ;;  %p1903_p13 = scmp.lt.s32.totalorder %s1897_s16, %s1897_s16 }
  0x1d   :  { %p1904_p0 = por %p1903_p13, %p1902_p12 }
  0x1f   :  { %p1905_p1 = pnand %p1904_p0, %p1898_p11 }
  0x21   :  { %1908 = shalt.err (!%p1905_p1)
}
  0x22   :  { %24 = dma.hbm_to_vmem [thread:$0]  %s2221_s0, 256, %s2010_s21, [#allocation3], %s1961_s30, %s1961_s30, %s1962_s6  }
  0x23   :  { %s1963_s18 = smov [#allocation7]   ;;  %s1909_s23 = scalar_lea.hbm %s2224_s3, 512 }
  0x24   :  { %s44_s19 = sshll.u32 %s1963_s18, 4  ;;  %p1910_p2 = scmp.ne.s32.totalorder %s2224_s3, %s1909_s23  ;;  %s45_s19 = int_to_ptr.vmem [resolvable:$true] %s44_s19 }
  0x25   :  { %p1913_p3 = scmp.lt.u32.totalorder %s1909_s23, %s2224_s3 }
  0x27   :  { %p1915_p4 = pnand %p1913_p3, %p1910_p2 }
  0x29   :  { %1918 = shalt.err (!%p1915_p4)
}
  0x2a   :  { %s1919_s28 = scalar_lea.vmem %s45_s19, 512  ;;  %p1924_p6 = scmp.lt.s32.totalorder %s45_s19, %s45_s19 }
  0x2b   :  { %p1920_p5 = scmp.ne.s32.totalorder %s45_s19, %s1919_s28  ;;  %p1925_p7 = scmp.lt.s32.totalorder %s1919_s28, %s1919_s28 }
  0x2d   :  { %p1926_p8 = por %p1925_p7, %p1924_p6 }
  0x2f   :  { %p1927_p9 = pnand %p1926_p8, %p1920_p5 }
  0x31   :  { %1930 = shalt.err (!%p1927_p9)
}
  0x32   :  { %50 = dma.hbm_to_vmem [thread:$0]  %s2224_s3, 512, %s45_s19, [#allocation6], %s1961_s30, %s1961_s30, %s1962_s6  }
  0x33   :  { %1953 = dma.done.wait [#allocation3], 256  }
  0x34   :  { %1954 = vsyncadd [#allocation3], 4294967040 }
  0x35   :  { %1955 = dma.done.wait [#allocation6], 1024  }
  0x36   :  { %1956 = vsyncadd [#allocation6], 4294966272  ;;  %vm75_vm0 = vcmask 261120   ;;  %v64_v0 = vld [vmem:[#allocation5] sm:$0xff]  ;;  %v65_v1 = vld [vmem:[#allocation5 + $0x8] sm:$0xff]  ;;  %v1964_v8 = vmov 0.0  }
  0x37   :  { %v66_v2 = vld [vmem:[#allocation5 + $0x10] sm:$0xff]  ;;  %v1796_v3 = vpack.c.bf16 %v65_v1, %v64_v0  ;;  %v67_v4 = vld [vmem:[#allocation5 + $0x18] sm:$0xff]  ;;  %1705 = vmatprep.subr.mxu1 %v1964_v8  ;;  %vm1965_vm1 = vmmov 0   ;;  %s1966_s7 = smov 96   ;;  %vm160_vm2 = vcmask 64512   ;;  %s1968_s8 = smov 88  }
  0x38   :  { %v62_v5 = vld [vmem:[#allocation2] sm:$0xff]  ;;  %v1800_v6 = vpack.c.bf16 %v67_v4, %v66_v2  ;;  %v63_v7 = vld [vmem:[#allocation2 + $0x8] sm:$0xff]  ;;  %1707 = vmatprep.mubr.msk.f32.mxu1 %vm1965_vm1, %v1964_v8  ;;  %s1969_s9 = smov 120   ;;  %s1970_s10 = smov 56   ;;  %vm1505_vm3 = vcmask 195584   ;;  %vm1502_vm4 = vcmask 130048  }
  0x39   :  { %1702 = vmatprep.mubr.msk.f32.mxu0 %vm75_vm0, %v62_v5  ;;  %1797 = vmatprep.subr.bf16.mxu0 %v1796_v3  ;;  %v1620_v9 = vld [vmem:[%s2223_s2] ss:$0 sm:$0xff]  ;;  %s1967_s2 = smov 64   ;;  %s1971_s11 = smov 112  }
  0x3a   :  { %1799 = vmatpush3.bf16.msra.mxu0 %v1796_v3  ;;  %s1972_s12 = smov 80   ;;  %s1973_s13 = smov 48  }
  0x3b   :  { %1801 = vmatprep.subr.bf16.mxu0 %v1800_v6  ;;  %s1974_s14 = smov 72   ;;  %s1975_s15 = smov 104  }
  0x3c   :  { %s1976_s16 = smov 40   ;;  %s1977_s1 = smov 16  }
  0x3d   :  { %s1978_s17 = smov 24   ;;  %s1979_s20 = smov [#allocation8]  }
  0x3e   :  { %1803 = vmatpush3.bf16.msra.mxu0 %v1800_v6  ;;  %s1607_s22 = sshll.u32 %s1979_s20, 4  ;;  %s1608_s22 = int_to_ptr.vmem [resolvable:$true] %s1607_s22 }
  0x3f   :  { %1725 = vmatprep.subr.mxu0 %v1964_v8  ;;  %s1931_s23 = scalar_lea.vmem %s1608_s22, 256  ;;  %p1936_p11 = scmp.lt.s32.totalorder %s1608_s22, %s1608_s22 }
  0x40   :  { %p1932_p10 = scmp.ne.s32.totalorder %s1608_s22, %s1931_s23  ;;  %p1937_p12 = scmp.lt.s32.totalorder %s1931_s23, %s1931_s23 }
  0x41   :  { %1703 = vmatmul.mubr.msk.f32.vlgmr.msra.gmra.mrb[0].mxu0 %vm75_vm0, %v63_v7 }
  0x42   :  { %1727 = vmatprep.mubr.msk.f32.mxu0 %vm1965_vm1, %v1964_v8  ;;  %p1938_p13 = por %p1937_p12, %p1936_p11 }
  0x44   :  { %p1939_p0 = pnand %p1938_p13, %p1932_p10 }
 0x114   :  { %v1704_v10 = vpop.f32.mrb[0].mxu0 }
 0x115   :  { %v148_v11 = vpop.f32.mrb[1].mxu0  ;;  %v2076_v13 = vadd.f32 %v1704_v10, %v1620_v9 }
 0x116   :  { %v2073_v12 = vadd.f32 %v1620_v9, %v148_v11 }
 0x118   :  { %158 = vrot.lane.b32.xlu0 %v2073_v12, %s1966_s7 }
 0x11c   :  { %236 = vrot.lane.b32.xlu0 %v2076_v13, %s1966_s7 }
 0x18a   :  { %v159_v14 = vpop.permute.xlu0 %158 }
 0x18b   :  { %1706 = vmatpush3.xpose.msk.msra.mxu1 %vm160_vm2, %v159_v14 }
 0x18c   :  { %1710 = vmatprep.subr.mxu1 %v1964_v8 }
 0x18e   :  { %1708 = vmatmul.mubr.msk.f32.vlgmr.msra.gmra.mrb[0].mxu1 %vm160_vm2, %v2073_v12  ;;  %v237_v15 = vpop.permute.xlu0 %236 }
 0x18f   :  { %1711 = vmatpush3.xpose.msk.msra.mxu1 %vm160_vm2, %v237_v15  ;;  %1712 = vmatprep.mubr.msk.f32.mxu1 %vm1965_vm1, %v1964_v8 }
 0x190   :  { %1715 = vmatprep.subr.mxu1 %v1964_v8 }
 0x192   :  { %1713 = vmatmul.mubr.msk.f32.vlgmr.msra.gmra.mrb[2].mxu1 %vm160_vm2, %v2076_v13 }
 0x193   :  { %1717 = vmatprep.mubr.msk.f32.mxu1 %vm1965_vm1, %v1964_v8 }
 0x261   :  { %v231_v16 = vpop.f32.mrb[0].mxu1 }
 0x262   :  { %v1709_v17 = vpop.f32.mrb[1].mxu1  ;;  %v312_v18 = vsel %vm160_vm2, %v231_v16, -inf }
 0x263   :  { %313 = vmax.xlane.f32.xlu1 %v312_v18 }
 0x265   :  { %v308_v19 = vpop.f32.mrb[2].mxu1 }
 0x266   :  { %v1714_v20 = vpop.f32.mrb[3].mxu1  ;;  %v315_v21 = vsel %vm160_vm2, %v308_v19, -inf }
 0x267   :  { %316 = vmax.xlane.f32.xlu1 %v315_v21 }
 0x278   :  { %334 = vrot.lane.b32.xlu1 %v2073_v12, %s1967_s2 }
 0x27c   :  { %410 = vrot.lane.b32.xlu1 %v2076_v13, %s1967_s2 }
 0x280   :  { %488 = vrot.lane.b32.xlu1 %v2073_v12, %s1968_s8 }
 0x284   :  { %566 = vrot.lane.b32.xlu1 %v2076_v13, %s1968_s8 }
 0x2f0   :  { %v314_v22 = vpop.xlane.xlu1 %313 }
 0x2f1   :  { %v318_v23 = vsub.f32 %v231_v16, %v314_v22 }
 0x2f3   :  { %v320_v24 = vmul.f32 1.442695, %v318_v23 }
 0x2f4   :  { %v317_v25 = vpop.xlane.xlu1 %316 }
 0x2f5   :  { %1833 = vpow2.f32 %v320_v24  ;;  %v319_v26 = vsub.f32 %v308_v19, %v317_v25 }
 0x2f7   :  { %v322_v27 = vmul.f32 1.442695, %v319_v26 }
 0x2f8   :  { %v335_v28 = vpop.permute.xlu1 %334 }
 0x2f9   :  { %1835 = vpow2.f32 %v322_v27  ;;  %1716 = vmatpush3.msra.mxu1 %v335_v28 }
 0x2fa   :  { %1720 = vmatprep.subr.mxu1 %v1964_v8 }
 0x2fc   :  { %v411_v29 = vpop.permute.xlu1 %410 }
 0x2ff   :  { %v1834_v30 = vpop.eup %1833 }
 0x300   :  { %v489_v31 = vpop.permute.xlu1 %488  ;;  %v324_v32 = vsel %vm160_vm2, %v1834_v30, 0.0 }
 0x301   :  { %325 = vadd.xlane.f32.xlu0 %v324_v32  ;;  %1726 = vmatpush3.xpose.msk.msra.mxu0 %vm160_vm2, %v489_v31 }
 0x302   :  { %1735 = vmatprep.subr.mxu0 %v1964_v8 }
 0x303   :  { %v1836_v33 = vpop.eup %1835 }
 0x304   :  { %v327_v34 = vsel %vm160_vm2, %v1836_v33, 0.0  ;;  %v567_v35 = vpop.permute.xlu1 %566 }
 0x305   :  { %328 = vadd.xlane.f32.xlu1 %v327_v34 }
 0x316   :  { %564 = vrot.lane.b32.xlu1 %v2076_v13, %s1969_s9 }
 0x317   :  { %486 = vrot.lane.b32.xlu0 %v2073_v12, %s1969_s9 }
 0x38e   :  { %v326_v36 = vpop.xlane.xlu0 %325 }
 0x38f   :  { %1837 = vrcp.f32 %v326_v36 }
 0x392   :  { %v329_v37 = vpop.xlane.xlu1 %328  ;;  %v487_v38 = vpop.permute.xlu0 %486 }
 0x393   :  { %1839 = vrcp.f32 %v329_v37  ;;  %1728 = vmatmul.mubr.msk.f32.vlgmr.msra.gmra.mrb[2].mxu0 %vm160_vm2, %v487_v38 }
 0x394   :  { %1737 = vmatprep.mubr.msk.f32.mxu0 %vm1965_vm1, %v1964_v8 }
 0x396   :  { %v565_v43 = vpop.permute.xlu1 %564 }
 0x399   :  { %v1838_v39 = vpop.eup %1837 }
 0x39a   :  { %v331_v40 = vmul.f32 %v1838_v39, %v1834_v30 }
 0x39c   :  { %1718 = vmatmul.mubr.msk.f32.vlgmr.msra.gmra.mrb[4].mxu1 %vm160_vm2, %v331_v40 }
 0x39d   :  { %v1840_v41 = vpop.eup %1839  ;;  %1721 = vmatpush3.msra.mxu1 %v411_v29  ;;  %1722 = vmatprep.mubr.msk.f32.mxu1 %vm1965_vm1, %v1964_v8 }
 0x39e   :  { %v333_v42 = vmul.f32 %v1840_v41, %v1836_v33  ;;  %1730 = vmatprep.subr.mxu1 %v1964_v8 }
 0x3a0   :  { %1723 = vmatmul.mubr.msk.f32.vlgmr.msra.gmra.mrb[6].mxu1 %vm160_vm2, %v333_v42 }
 0x3a1   :  { %1732 = vmatprep.mubr.msk.f32.mxu1 %vm1965_vm1, %v1964_v8 }
 0x3a4   :  { %1731 = vmatpush3.xpose.msk.msra.mxu1 %vm160_vm2, %v567_v35 }
 0x3a5   :  { %1740 = vmatprep.subr.mxu1 %v1964_v8 }
 0x3a7   :  { %1733 = vmatmul.mubr.msk.f32.vlgmr.msra.gmra.mrb[8].mxu1 %vm160_vm2, %v565_v43 }
 0x3a8   :  { %1742 = vmatprep.mubr.msk.f32.mxu1 %vm1965_vm1, %v1964_v8 }
 0x466   :  { %v560_v44 = vpop.f32.mrb[2].mxu0 }
 0x467   :  { %v1729_v45 = vpop.f32.mrb[3].mxu0  ;;  %v642_v46 = vsel %vm160_vm2, %v560_v44, -inf }
 0x468   :  { %643 = vmax.xlane.f32.xlu1 %v642_v46 }
 0x46f   :  { %v2120_v47 = vpop.f32.mrb[4].mxu1 }
 0x470   :  { %v1719_v48 = vpop.f32.mrb[5].mxu1 }
 0x473   :  { %v2122_v49 = vpop.f32.mrb[6].mxu1 }
 0x474   :  { %v1724_v50 = vpop.f32.mrb[7].mxu1 }
 0x47a   :  { %v638_v51 = vpop.f32.mrb[8].mxu1 }
 0x47b   :  { %v1734_v52 = vpop.f32.mrb[9].mxu1  ;;  %v645_v53 = vsel %vm160_vm2, %v638_v51, -inf }
 0x47c   :  { %646 = vmax.xlane.f32.xlu0 %v645_v53 }
 0x492   :  { %740 = vrot.lane.b32.xlu0 %v2076_v13, %s1970_s10 }
 0x496   :  { %816 = vrot.lane.b32.xlu0 %v2073_v12, %s1971_s11 }
 0x4f5   :  { %v644_v54 = vpop.xlane.xlu1 %643 }
 0x4f6   :  { %v648_v55 = vsub.f32 %v560_v44, %v644_v54 }
 0x4f8   :  { %v650_v56 = vmul.f32 1.442695, %v648_v55 }
 0x4fa   :  { %1841 = vpow2.f32 %v650_v56 }
 0x504   :  { %v1842_v57 = vpop.eup %1841 }
 0x505   :  { %v654_v58 = vsel %vm160_vm2, %v1842_v57, 0.0 }
 0x506   :  { %655 = vadd.xlane.f32.xlu1 %v654_v58 }
 0x509   :  { %v647_v59 = vpop.xlane.xlu0 %646 }
 0x50a   :  { %v649_v61 = vsub.f32 %v638_v51, %v647_v59 }
 0x50c   :  { %v652_v62 = vmul.f32 1.442695, %v649_v61 }
 0x50d   :  { %v741_v60 = vpop.permute.xlu0 %740 }
 0x50e   :  { %1741 = vmatpush3.msra.mxu1 %v741_v60  ;;  %1843 = vpow2.f32 %v652_v62 }
 0x50f   :  { %1750 = vmatprep.subr.mxu1 %v1964_v8 }
 0x511   :  { %v817_v6 = vpop.permute.xlu0 %816 }
 0x517   :  { %664 = vrot.lane.b32.xlu1 %v2073_v12, %s1970_s10 }
 0x518   :  { %v1844_v63 = vpop.eup %1843 }
 0x519   :  { %v657_v0 = vsel %vm160_vm2, %v1844_v63, 0.0 }
 0x51b   :  { %818 = vrot.lane.b32.xlu1 %v2073_v12, %s1972_s12 }
 0x51f   :  { %896 = vrot.lane.b32.xlu1 %v2076_v13, %s1972_s12 }
 0x543   :  { %658 = vadd.xlane.f32.xlu1 %v657_v0 }
 0x554   :  { %894 = vrot.lane.b32.xlu1 %v2076_v13, %s1971_s11 }
 0x593   :  { %v656_v1 = vpop.xlane.xlu1 %655 }
 0x594   :  { %1845 = vrcp.f32 %v656_v1 }
 0x597   :  { %v665_v2 = vpop.permute.xlu1 %664 }
 0x598   :  { %1736 = vmatpush3.msra.mxu0 %v665_v2 }
 0x599   :  { %1745 = vmatprep.subr.mxu0 %v1964_v8 }
 0x59b   :  { %v819_v5 = vpop.permute.xlu1 %818 }
 0x59e   :  { %v1846_v3 = vpop.eup %1845 }
 0x59f   :  { %v661_v4 = vmul.f32 %v1846_v3, %v1842_v57  ;;  %v897_v7 = vpop.permute.xlu1 %896 }
 0x5a1   :  { %1738 = vmatmul.mubr.msk.f32.vlgmr.msra.gmra.mrb[4].mxu0 %vm160_vm2, %v661_v4 }
 0x5a2   :  { %1746 = vmatpush3.xpose.msk.msra.mxu0 %vm160_vm2, %v819_v5  ;;  %1747 = vmatprep.mubr.msk.f32.mxu0 %vm1965_vm1, %v1964_v8 }
 0x5a3   :  { %1755 = vmatprep.subr.mxu0 %v1964_v8 }
 0x5a5   :  { %1748 = vmatmul.mubr.msk.f32.vlgmr.msra.gmra.mrb[6].mxu0 %vm160_vm2, %v817_v6 }
 0x5a6   :  { %1757 = vmatprep.mubr.msk.f32.mxu0 %vm1965_vm1, %v1964_v8 }
 0x5d0   :  { %v659_v9 = vpop.xlane.xlu1 %658 }
 0x5d1   :  { %1847 = vrcp.f32 %v659_v9 }
 0x5d4   :  { %v895_v14 = vpop.permute.xlu1 %894 }
 0x5db   :  { %v1848_v10 = vpop.eup %1847 }
 0x5dc   :  { %v663_v11 = vmul.f32 %v1848_v10, %v1844_v63 }
 0x5de   :  { %1743 = vmatmul.mubr.msk.f32.vlgmr.msra.gmra.mrb[10].mxu1 %vm160_vm2, %v663_v11 }
 0x5df   :  { %1751 = vmatpush3.xpose.msk.msra.mxu1 %vm160_vm2, %v897_v7  ;;  %1752 = vmatprep.mubr.msk.f32.mxu1 %vm1965_vm1, %v1964_v8 }
 0x5e0   :  { %1760 = vmatprep.subr.mxu1 %v1964_v8 }
 0x5e2   :  { %1753 = vmatmul.mubr.msk.f32.vlgmr.msra.gmra.mrb[12].mxu1 %vm160_vm2, %v895_v14  ;;  %v1508_v14 = vld [vmem:[#allocation7] sm:$0xff] }
 0x5e3   :  { %1762 = vmatprep.mubr.msk.f32.mxu1 %vm1965_vm1, %v1964_v8 }
 0x674   :  { %v2151_v15 = vpop.f32.mrb[4].mxu0 }
 0x675   :  { %v1739_v16 = vpop.f32.mrb[5].mxu0 }
 0x676   :  { %v1510_v16 = vld [vmem:[#allocation7 + $0x10] sm:$0xff] }
 0x678   :  { %v890_v17 = vpop.f32.mrb[6].mxu0 }
 0x679   :  { %v1749_v18 = vpop.f32.mrb[7].mxu0  ;;  %v972_v19 = vsel %vm160_vm2, %v890_v17, -inf }
 0x67a   :  { %973 = vmax.xlane.f32.xlu0 %v972_v19 }
 0x6b1   :  { %v2154_v20 = vpop.f32.mrb[10].mxu1 }
 0x6b2   :  { %v1744_v21 = vpop.f32.mrb[11].mxu1 }
 0x6b5   :  { %v968_v22 = vpop.f32.mrb[12].mxu1 }
 0x6b6   :  { %v1754_v23 = vpop.f32.mrb[13].mxu1  ;;  %v975_v24 = vsel %vm160_vm2, %v968_v22, -inf }
 0x6b7   :  { %976 = vmax.xlane.f32.xlu1 %v975_v24 }
 0x6c8   :  { %994 = vrot.lane.b32.xlu1 %v2073_v12, %s1973_s13 }
 0x6cc   :  { %1148 = vrot.lane.b32.xlu1 %v2073_v12, %s1974_s14 }
 0x6d0   :  { %1226 = vrot.lane.b32.xlu1 %v2076_v13, %s1974_s14 }
 0x6d4   :  { %1224 = vrot.lane.b32.xlu1 %v2076_v13, %s1975_s15 }
 0x707   :  { %v974_v25 = vpop.xlane.xlu0 %973 }
 0x708   :  { %v978_v26 = vsub.f32 %v890_v17, %v974_v25 }
 0x70a   :  { %v980_v27 = vmul.f32 1.442695, %v978_v26 }
 0x70c   :  { %1849 = vpow2.f32 %v980_v27 }
 0x716   :  { %v1850_v28 = vpop.eup %1849 }
 0x717   :  { %v984_v29 = vsel %vm160_vm2, %v1850_v28, 0.0 }
 0x718   :  { %985 = vadd.xlane.f32.xlu0 %v984_v29 }
 0x72e   :  { %1070 = vrot.lane.b32.xlu0 %v2076_v13, %s1973_s13 }
 0x744   :  { %v977_v30 = vpop.xlane.xlu1 %976 }
 0x745   :  { %v979_v31 = vsub.f32 %v968_v22, %v977_v30 }
 0x747   :  { %v982_v32 = vmul.f32 1.442695, %v979_v31 }
 0x748   :  { %v995_v33 = vpop.permute.xlu1 %994 }
 0x749   :  { %1851 = vpow2.f32 %v982_v32  ;;  %1756 = vmatpush3.msra.mxu0 %v995_v33 }
 0x74a   :  { %1765 = vmatprep.subr.mxu0 %v1964_v8 }
 0x74c   :  { %v1149_v40 = vpop.permute.xlu1 %1148 }
 0x750   :  { %v1227_v44 = vpop.permute.xlu1 %1226 }
 0x753   :  { %v1852_v34 = vpop.eup %1851 }
 0x754   :  { %v987_v35 = vsel %vm160_vm2, %v1852_v34, 0.0  ;;  %v1225_v46 = vpop.permute.xlu1 %1224 }
 0x755   :  { %988 = vadd.xlane.f32.xlu0 %v987_v35 }
 0x76b   :  { %1146 = vrot.lane.b32.xlu0 %v2073_v12, %s1975_s15 }
 0x7a5   :  { %v986_v36 = vpop.xlane.xlu0 %985 }
 0x7a6   :  { %1853 = vrcp.f32 %v986_v36 }
 0x7a9   :  { %v1071_v37 = vpop.permute.xlu0 %1070 }
 0x7aa   :  { %1761 = vmatpush3.msra.mxu1 %v1071_v37 }
 0x7ab   :  { %1770 = vmatprep.subr.mxu1 %v1964_v8 }
 0x7b0   :  { %v1854_v38 = vpop.eup %1853 }
 0x7b1   :  { %v991_v39 = vmul.f32 %v1854_v38, %v1850_v28 }
 0x7b3   :  { %1758 = vmatmul.mubr.msk.f32.vlgmr.msra.gmra.mrb[8].mxu0 %vm160_vm2, %v991_v39 }
 0x7b4   :  { %1766 = vmatpush3.xpose.msk.msra.mxu0 %vm160_vm2, %v1149_v40  ;;  %1767 = vmatprep.mubr.msk.f32.mxu0 %vm1965_vm1, %v1964_v8 }
 0x7b5   :  { %1775 = vmatprep.subr.mxu0 %v1964_v8 }
 0x7e2   :  { %v989_v41 = vpop.xlane.xlu0 %988 }
 0x7e3   :  { %1855 = vrcp.f32 %v989_v41 }
 0x7e6   :  { %v1147_v42 = vpop.permute.xlu0 %1146 }
 0x7e7   :  { %1768 = vmatmul.mubr.msk.f32.vlgmr.msra.gmra.mrb[10].mxu0 %vm160_vm2, %v1147_v42 }
 0x7e8   :  { %1777 = vmatprep.mubr.msk.f32.mxu0 %vm1965_vm1, %v1964_v8 }
 0x7ed   :  { %v1856_v43 = vpop.eup %1855 }
 0x7ee   :  { %v993_v45 = vmul.f32 %v1856_v43, %v1852_v34 }
 0x7f0   :  { %1763 = vmatmul.mubr.msk.f32.vlgmr.msra.gmra.mrb[14].mxu1 %vm160_vm2, %v993_v45 }
 0x7f1   :  { %1771 = vmatpush3.xpose.msk.msra.mxu1 %vm160_vm2, %v1227_v44  ;;  %1772 = vmatprep.mubr.msk.f32.mxu1 %vm1965_vm1, %v1964_v8 }
 0x7f2   :  { %1780 = vmatprep.subr.mxu1 %v1964_v8 }
 0x7f4   :  { %1773 = vmatmul.mubr.msk.f32.vlgmr.msra.gmra.mrb[16].mxu1 %vm160_vm2, %v1225_v46 }
 0x7f5   :  { %1782 = vmatprep.mubr.msk.f32.mxu1 %vm1965_vm1, %v1964_v8 }
 0x886   :  { %v1066_v48 = vpop.f32.mrb[8].mxu0 }
 0x887   :  { %v1759_v50 = vpop.f32.mrb[9].mxu0 }
 0x8ba   :  { %v1220_v51 = vpop.f32.mrb[10].mxu0 }
 0x8bb   :  { %v1769_v52 = vpop.f32.mrb[11].mxu0  ;;  %v1302_v53 = vsel %vm160_vm2, %v1220_v51, -inf }
 0x8bc   :  { %1303 = vmax.xlane.f32.xlu0 %v1302_v53 }
 0x8c3   :  { %v1142_v54 = vpop.f32.mrb[14].mxu1 }
 0x8c4   :  { %v1764_v55 = vpop.f32.mrb[15].mxu1 }
 0x8c7   :  { %v1298_v56 = vpop.f32.mrb[16].mxu1 }
 0x8c8   :  { %v1774_v57 = vpop.f32.mrb[17].mxu1  ;;  %v1305_v58 = vsel %vm160_vm2, %v1298_v56, -inf }
 0x8c9   :  { %1306 = vmax.xlane.f32.xlu1 %v1305_v58 }
 0x8da   :  { %1324 = vrot.lane.b32.xlu1 %v2073_v12, %s1976_s16 }
 0x8de   :  { %1478 = vrot.lane.b32.xlu1 %v2151_v15, %s1962_s6  ;;  %v1509_v15 = vld [vmem:[#allocation7 + $0x8] sm:$0xff] }
 0x8df   :  { %v1804_v17 = vpack.c.bf16 %v1509_v15, %v1508_v14 }
 0x8e2   :  { %1480 = vrot.lane.b32.xlu1 %v2154_v20, %s1962_s6 }
 0x8e6   :  { %1488 = vrot.lane.b32.xlu1 %v1142_v54, %s1977_s1 }
 0x949   :  { %v1304_v8 = vpop.xlane.xlu0 %1303 }
 0x94a   :  { %v1308_v59 = vsub.f32 %v1220_v51, %v1304_v8 }
 0x94c   :  { %v1310_v60 = vmul.f32 1.442695, %v1308_v59 }
 0x94e   :  { %1857 = vpow2.f32 %v1310_v60 }
 0x956   :  { %v1307_v61 = vpop.xlane.xlu1 %1306 }
 0x957   :  { %v1309_v62 = vsub.f32 %v1298_v56, %v1307_v61 }
 0x958   :  { %v1858_v63 = vpop.eup %1857 }
 0x959   :  { %v1312_v0 = vmul.f32 1.442695, %v1309_v62  ;;  %v1314_v1 = vsel %vm160_vm2, %v1858_v63, 0.0 }
 0x95a   :  { %v1325_v2 = vpop.permute.xlu1 %1324  ;;  %1315 = vadd.xlane.f32.xlu0 %v1314_v1 }
 0x95b   :  { %1859 = vpow2.f32 %v1312_v0  ;;  %1776 = vmatpush3.msra.mxu0 %v1325_v2 }
 0x95c   :  { %1805 = vmatprep.subr.bf16.mxu0 %v1804_v17 }
 0x95e   :  { %v1479_v23 = vpop.permute.xlu1 %1478 }
 0x95f   :  { %v1500_v25 = vsel %vm160_vm2, %v2120_v47, %v1479_v23  ;;  %v1647_v47 = vld [vmem:[%s2225_s4] ss:$0 sm:$0xff] }
 0x962   :  { %v1481_v29 = vpop.permute.xlu1 %1480 }
 0x963   :  { %v1501_v31 = vsel %vm160_vm2, %v2122_v49, %v1481_v29 }
 0x965   :  { %v1860_v12 = vpop.eup %1859 }
 0x966   :  { %v1317_v3 = vsel %vm160_vm2, %v1860_v12, 0.0  ;;  %v1489_v30 = vpop.permute.xlu1 %1488 }
 0x967   :  { %1318 = vadd.xlane.f32.xlu0 %v1317_v3  ;;  %v1504_v32 = vsel %vm1502_vm4, %v1501_v31, %v1489_v30 }
 0x97d   :  { %1400 = vrot.lane.b32.xlu0 %v2076_v13, %s1976_s16  ;;  %v1511_v13 = vld [vmem:[#allocation7 + $0x18] sm:$0xff] }
 0x97e   :  { %v1808_v18 = vpack.c.bf16 %v1511_v13, %v1510_v16 }
 0x981   :  { %1486 = vrot.lane.b32.xlu0 %v1066_v48, %s1977_s1 }
 0x9e7   :  { %v1316_v4 = vpop.xlane.xlu0 %1315 }
 0x9e8   :  { %1861 = vrcp.f32 %v1316_v4 }
 0x9f2   :  { %v1862_v5 = vpop.eup %1861 }
 0x9f3   :  { %v1321_v6 = vmul.f32 %v1862_v5, %v1858_v63 }
 0x9f4   :  { %v1319_v7 = vpop.xlane.xlu0 %1318 }
 0x9f5   :  { %1863 = vrcp.f32 %v1319_v7  ;;  %1778 = vmatmul.mubr.msk.f32.vlgmr.msra.gmra.mrb[12].mxu0 %vm160_vm2, %v1321_v6 }
 0x9f6   :  { %1807 = vmatpush3.bf16.msra.mxu0 %v1804_v17 }
 0x9f7   :  { %1809 = vmatprep.subr.bf16.mxu0 %v1808_v18 }
 0x9f8   :  { %v1401_v9 = vpop.permute.xlu0 %1400 }
 0x9f9   :  { %1781 = vmatpush3.msra.mxu1 %v1401_v9 }
 0x9fa   :  { %1811 = vmatpush3.bf16.msra.mxu0 %v1808_v18 }
 0x9fc   :  { %v1487_v24 = vpop.permute.xlu0 %1486 }
 0x9fd   :  { %v1503_v26 = vsel %vm1502_vm4, %v1500_v25, %v1487_v24 }
 0x9ff   :  { %v1864_v10 = vpop.eup %1863 }
 0xa00   :  { %v1323_v11 = vmul.f32 %v1864_v10, %v1860_v12 }
 0xa02   :  { %1783 = vmatmul.mubr.msk.f32.vlgmr.msra.gmra.mrb[18].mxu1 %vm160_vm2, %v1323_v11 }
 0xac8   :  { %v1396_v19 = vpop.f32.mrb[12].mxu0 }
 0xac9   :  { %1494 = vrot.lane.b32.xlu0 %v1396_v19, %s1978_s17  ;;  %v1779_v20 = vpop.f32.mrb[13].mxu0 }
 0xad5   :  { %v1472_v21 = vpop.f32.mrb[18].mxu1 }
 0xad6   :  { %1496 = vrot.lane.b32.xlu1 %v1472_v21, %s1978_s17  ;;  %v1784_v22 = vpop.f32.mrb[19].mxu1 }
 0xb3b   :  { %v1495_v27 = vpop.permute.xlu0 %1494 }
 0xb3c   :  { %v1506_v28 = vsel %vm1505_vm3, %v1503_v26, %v1495_v27 }
 0xb3d   :  { %1793 = vmatprep.mubr.msk.f32.mxu0 %vm75_vm0, %v1506_v28 }
 0xb48   :  { %v1497_v33 = vpop.permute.xlu1 %1496 }
 0xb49   :  { %v1507_v34 = vsel %vm1505_vm3, %v1504_v32, %v1497_v33 }
 0xb4a   :  { %1794 = vmatmul.mubr.msk.f32.vlgmr.msra.gmra.mrb[14].mxu0 %vm75_vm0, %v1507_v34 }
 0xc1d   :  { %v1795_v35 = vpop.f32.mrb[14].mxu0 }
 0xc1e   :  { %v1597_v36 = vadd.f32 %v1795_v35, %v1647_v47  ;;  %v1591_v37 = vpop.f32.mrb[15].mxu0 }
 0xc1f   :  { %v1592_v38 = vadd.f32 %v1647_v47, %v1591_v37 }
 0xc20   :  { %1601 = vst.msk [vmem:[#allocation8 + $0x8] sm:$0xff] %vm75_vm0, %v1597_v36 }
 0xc21   :  { %1600 = vst.msk [vmem:[#allocation8] sm:$0xff] %vm75_vm0, %v1592_v38 }
 0xc22   :  { %1942 = shalt.err (!%p1939_p0)
}
 0xc23   :  { %s1943_s25 = scalar_lea.hbm %s2226_s5, 256 }
 0xc24   :  { %p1944_p1 = scmp.ne.s32.totalorder %s2226_s5, %s1943_s25  ;;  %p1947_p2 = scmp.lt.u32.totalorder %s1943_s25, %s2226_s5 }
 0xc26   :  { %p1949_p3 = pnand %p1947_p2, %p1944_p1 }
 0xc28   :  { %1952 = shalt.err (!%p1949_p3)
}
 0xc29   :  { %1613 = dma.vmem_to_hbm [thread:$0]  %s1608_s22, 256, %s2226_s5, [#allocation4], %s1961_s30, %s1961_s30, %s1962_s6  }
 0xc2a   :  { %1957 = dma.done.wait [#allocation4], 256  }
 0xc2b   :  { %1958 = vsyncadd [#allocation4], 4294967040 }
 0xc2c   :  { %1617 = vsyncpa [#allocation3], 1 }
 0xc2d   :  { %1618 = vsyncpa [#allocation6], 1 }
 0xc2e   :  { %1619 = vsyncpa [#allocation4], 1 }

</bundles_post_ra>
